<compile_context>
chip_gen: v7x
topology: tpu7x:2x2x1
jax: 0.10.0
libtpu: 0.0.40
codegen_flags: <defaults>
</compile_context>

<pallas_src>
import functools

import jax
import jax.numpy as jnp
from jax import lax
from jax.experimental import pallas as pl
from jax.experimental.pallas import tpu as pltpu


def _sft_kernel(x_ref, rpad_ref, mask_ref, wconv_ref, bconv_ref,
                wfuse_ref, bfuse_ref, out_ref, *, H, W, C):
    # x_ref:     (1, C, S)            S = H*W, spatial on lanes (lane-dense)
    # rpad_ref:  (1, C, S + 2W + 2)   flat res, zero-padded by W+1 each side
    # mask_ref:  (3, S)               column masks for dx = 0, 1, 2
    # wconv_ref: (2C, 9C)             [wmul; wadd], tap-major along K
    # bconv_ref: (2C, 1)              [bmul; badd]
    # wfuse_ref: (C, 2C)              1x1 fuse weight (out, in)
    # bfuse_ref: (C, 1)
    # out_ref:   (1, C, S)
    S = H * W
    x = x_ref[0]                                     # (C, S) f32

    # im2col: 9 statically shifted, column-masked views of the flat padded res.
    # Shift offset for tap (dy, dx) is dy*W + dx; the dx-dependent mask zeroes
    # the columns that would otherwise wrap across image rows.
    patches = []
    for dy in range(3):
        for dx in range(3):
            off = dy * W + dx                        # static lane offset
            p = rpad_ref[0, :, off:off + S]          # (C, S)
            if dx != 1:
                p = p * mask_ref[dx:dx + 1, :]       # (1, S) broadcast
            patches.append(p)
    patches = jnp.concatenate(patches, axis=0)       # (9C, S)

    # Both 3x3 convs (mul and add) in a single MXU matmul, K = 9C.
    conv = jnp.dot(wconv_ref[...], patches,
                   preferred_element_type=jnp.float32) + bconv_ref[...]
    mul = conv[:C]                                   # (C, S)
    add = conv[C:]                                   # (C, S)

    y = mul * x + add                                # (C, S), f32 VPU work

    # 1x1 fuse conv over cat([x, y], channel) as one (C, 2C) @ (2C, S) matmul.
    xy = jnp.concatenate([x, y], axis=0)             # (2C, S)
    fuse = jnp.dot(wfuse_ref[...], xy,
                   preferred_element_type=jnp.float32) + bfuse_ref[...]

    out_ref[0] = fuse.astype(out_ref.dtype)


@jax.jit
def sft_forward(x_nchw, res_nchw, params):
    """x_nchw, res_nchw: (N, C, H, W) float32. Returns (N, C, H, W)."""
    wmul, bmul, wadd, badd, wfuse, bfuse = params
    N, C, H, W = x_nchw.shape
    S = H * W
    SP = S + 2 * W + 2

    # NCHW stays NCHW; only flatten spatial (free, contiguous reshape).
    x_flat = x_nchw.reshape(N, C, S)
    res_flat = lax.stop_gradient(res_nchw).reshape(N, C, S)   # res.detach()
    rpad = jnp.pad(res_flat, ((0, 0), (0, 0), (W + 1, W + 1)))

    # Column masks for the flat-shift im2col (kill cross-row wraparound).
    col = jnp.arange(S, dtype=jnp.int32) % W
    mask = jnp.stack([
        (col != 0).astype(x_nchw.dtype),             # dx = 0 (left neighbor)
        jnp.ones((S,), x_nchw.dtype),                # dx = 1 (center)
        (col != W - 1).astype(x_nchw.dtype),         # dx = 2 (right neighbor)
    ], axis=0)                                       # (3, S)

    # PyTorch conv weight (out, in, kh, kw) -> (out, 9*in), tap-major columns.
    wm = jnp.transpose(wmul, (0, 2, 3, 1)).reshape(C, 9 * C)
    wa = jnp.transpose(wadd, (0, 2, 3, 1)).reshape(C, 9 * C)
    wconv = jnp.concatenate([wm, wa], axis=0)        # (2C, 9C)
    bconv = jnp.concatenate([bmul, badd]).reshape(2 * C, 1)
    wf = wfuse[:, :, 0, 0]                           # (C, 2C)
    bf = bfuse.reshape(C, 1)

    kernel = functools.partial(_sft_kernel, H=H, W=W, C=C)

    out_flat = pl.pallas_call(
        kernel,
        out_shape=jax.ShapeDtypeStruct((N, C, S), x_nchw.dtype),
        grid_spec=pltpu.PrefetchScalarGridSpec(
            num_scalar_prefetch=0,
            grid=(N,),
            in_specs=[
                pl.BlockSpec((1, C, S), lambda n: (n, 0, 0)),
                pl.BlockSpec((1, C, SP), lambda n: (n, 0, 0)),
                pl.BlockSpec((3, S), lambda n: (0, 0)),
                pl.BlockSpec((2 * C, 9 * C), lambda n: (0, 0)),
                pl.BlockSpec((2 * C, 1), lambda n: (0, 0)),
                pl.BlockSpec((C, 2 * C), lambda n: (0, 0)),
                pl.BlockSpec((C, 1), lambda n: (0, 0)),
            ],
            out_specs=pl.BlockSpec((1, C, S), lambda n: (n, 0, 0)),
        ),
        compiler_params=pltpu.CompilerParams(
            dimension_semantics=("parallel",)),
    )(x_flat, rpad, mask, wconv, bconv, wf, bf)

    return out_flat.reshape(N, C, H, W)


def _reference_sft(x_nchw, res_nchw, params):
    """Plain-JAX reference (mirrors the PyTorch module) for verification."""
    wmul, bmul, wadd, badd, wfuse, bfuse = params
    dn = lax.conv_dimension_numbers(x_nchw.shape, wmul.shape,
                                    ("NCHW", "OIHW", "NCHW"))

    def conv(inp, w, b, pad):
        out = lax.conv_general_dilated(inp, w, (1, 1), [(pad, pad), (pad, pad)],
                                       dimension_numbers=dn)
        return out + b.reshape(1, -1, 1, 1)

    mul = conv(res_nchw, wmul, bmul, 1)
    add = conv(res_nchw, wadd, badd, 1)
    cat = jnp.concatenate([x_nchw, mul * x_nchw + add], axis=1)
    dn1 = lax.conv_dimension_numbers(cat.shape, wfuse.shape,
                                     ("NCHW", "OIHW", "NCHW"))
    fuse = lax.conv_general_dilated(cat, wfuse, (1, 1), [(0, 0), (0, 0)],
                                    dimension_numbers=dn1)
    return fuse + bfuse.reshape(1, -1, 1, 1)


if __name__ == "__main__":
    N, C, H, W = 2, 8, 16, 16   # nc = 8; H*W = 256 -> lane-dense blocks

    key = jax.random.PRNGKey(0)
    k = jax.random.split(key, 8)
    x = jax.random.normal(k[0], (N, C, H, W), jnp.float32)
    res = jax.random.normal(k[1], (N, C, H, W), jnp.float32)

    # Deterministic synthetic parameters (shapes from the module's __init__).
    scale3 = 1.0 / (C * 9) ** 0.5
    scale1 = 1.0 / (2 * C) ** 0.5
    wmul = jax.random.normal(k[2], (C, C, 3, 3), jnp.float32) * scale3
    bmul = jax.random.normal(k[3], (C,), jnp.float32) * 0.1
    wadd = jax.random.normal(k[4], (C, C, 3, 3), jnp.float32) * scale3
    badd = jax.random.normal(k[5], (C,), jnp.float32) * 0.1
    wfuse = jax.random.normal(k[6], (C, 2 * C, 1, 1), jnp.float32) * scale1
    bfuse = jax.random.normal(k[7], (C,), jnp.float32) * 0.1
    params = (wmul, bmul, wadd, badd, wfuse, bfuse)

    out = jax.block_until_ready(sft_forward(x, res, params))
    ref = jax.block_until_ready(_reference_sft(x, res, params))

    assert out.shape == (N, C, H, W)
    err = jnp.max(jnp.abs(out - ref))
    assert jnp.allclose(out, ref, atol=1e-4, rtol=1e-4), f"max abs err = {err}"

    print("KERNEL_OK")
</pallas_src>

<mosaic_0001>
module attributes {stable_mosaic.version = 11 : i64} {
  func.func @_sft_kernel(%arg0: i32, %arg1: memref<1x8x256xf32, #tpu.memory_space<vmem>>, %arg2: memref<1x8x290xf32, #tpu.memory_space<vmem>>, %arg3: memref<3x256xf32, #tpu.memory_space<vmem>>, %arg4: memref<16x72xf32, #tpu.memory_space<vmem>>, %arg5: memref<16x1xf32, #tpu.memory_space<vmem>>, %arg6: memref<8x16xf32, #tpu.memory_space<vmem>>, %arg7: memref<8x1xf32, #tpu.memory_space<vmem>>, %arg8: memref<1x8x256xf32, #tpu.memory_space<vmem>>) attributes {dimension_semantics = [#tpu.dimension_semantics<parallel>], iteration_bounds = array<i64: 2>, scalar_prefetch = 0 : i64, scratch_operands = 0 : i64, tpu.core_type = #tpu.core_type<tc>, window_params = [{transform_indices = @transform_0, window_bounds = array<i64: 1, 8, 256>}, {transform_indices = @transform_1, window_bounds = array<i64: 1, 8, 290>}, {pipeline_mode = #tpu.pipeline_mode<synchronous>, transform_indices = @transform_2, window_bounds = array<i64: 3, 256>}, {pipeline_mode = #tpu.pipeline_mode<synchronous>, transform_indices = @transform_3, window_bounds = array<i64: 16, 72>}, {pipeline_mode = #tpu.pipeline_mode<synchronous>, transform_indices = @transform_4, window_bounds = array<i64: 16, 1>}, {pipeline_mode = #tpu.pipeline_mode<synchronous>, transform_indices = @transform_5, window_bounds = array<i64: 8, 16>}, {pipeline_mode = #tpu.pipeline_mode<synchronous>, transform_indices = @transform_6, window_bounds = array<i64: 8, 1>}, {transform_indices = @transform_7, window_bounds = array<i64: 1, 8, 256>}]} {
    %c0 = arith.constant 0 : index
    %c0_0 = arith.constant 0 : index
    %c0_1 = arith.constant 0 : index
    %0 = vector.load %arg1[%c0, %c0_0, %c0_1] : memref<1x8x256xf32, #tpu.memory_space<vmem>>, vector<1x8x256xf32>
    %1 = vector.shape_cast %0 : vector<1x8x256xf32> to vector<8x256xf32>
    %c0_2 = arith.constant 0 : index
    %c0_3 = arith.constant 0 : index
    %c0_4 = arith.constant 0 : index
    %2 = vector.load %arg2[%c0_2, %c0_3, %c0_4] : memref<1x8x290xf32, #tpu.memory_space<vmem>>, vector<1x8x256xf32>
    %3 = vector.shape_cast %2 : vector<1x8x256xf32> to vector<8x256xf32>
    %c0_5 = arith.constant 0 : index
    %c0_6 = arith.constant 0 : index
    %4 = vector.load %arg3[%c0_5, %c0_6] : memref<3x256xf32, #tpu.memory_space<vmem>>, vector<1x256xf32>
    %5 = vector.broadcast %4 : vector<1x256xf32> to vector<8x256xf32>
    %6 = arith.mulf %3, %5 : vector<8x256xf32>
    %c0_7 = arith.constant 0 : index
    %c0_8 = arith.constant 0 : index
    %c1 = arith.constant 1 : index
    %7 = vector.load %arg2[%c0_7, %c0_8, %c1] : memref<1x8x290xf32, #tpu.memory_space<vmem>>, vector<1x8x256xf32>
    %8 = vector.shape_cast %7 : vector<1x8x256xf32> to vector<8x256xf32>
    %c0_9 = arith.constant 0 : index
    %c0_10 = arith.constant 0 : index
    %c2 = arith.constant 2 : index
    %9 = vector.load %arg2[%c0_9, %c0_10, %c2] : memref<1x8x290xf32, #tpu.memory_space<vmem>>, vector<1x8x256xf32>
    %10 = vector.shape_cast %9 : vector<1x8x256xf32> to vector<8x256xf32>
    %c2_11 = arith.constant 2 : index
    %c0_12 = arith.constant 0 : index
    %11 = vector.load %arg3[%c2_11, %c0_12] : memref<3x256xf32, #tpu.memory_space<vmem>>, vector<1x256xf32>
    %12 = vector.broadcast %11 : vector<1x256xf32> to vector<8x256xf32>
    %13 = arith.mulf %10, %12 : vector<8x256xf32>
    %c0_13 = arith.constant 0 : index
    %c0_14 = arith.constant 0 : index
    %c16 = arith.constant 16 : index
    %14 = vector.load %arg2[%c0_13, %c0_14, %c16] : memref<1x8x290xf32, #tpu.memory_space<vmem>>, vector<1x8x256xf32>
    %15 = vector.shape_cast %14 : vector<1x8x256xf32> to vector<8x256xf32>
    %c0_15 = arith.constant 0 : index
    %c0_16 = arith.constant 0 : index
    %16 = vector.load %arg3[%c0_15, %c0_16] : memref<3x256xf32, #tpu.memory_space<vmem>>, vector<1x256xf32>
    %17 = vector.broadcast %16 : vector<1x256xf32> to vector<8x256xf32>
    %18 = arith.mulf %15, %17 : vector<8x256xf32>
    %c0_17 = arith.constant 0 : index
    %c0_18 = arith.constant 0 : index
    %c17 = arith.constant 17 : index
    %19 = vector.load %arg2[%c0_17, %c0_18, %c17] : memref<1x8x290xf32, #tpu.memory_space<vmem>>, vector<1x8x256xf32>
    %20 = vector.shape_cast %19 : vector<1x8x256xf32> to vector<8x256xf32>
    %c0_19 = arith.constant 0 : index
    %c0_20 = arith.constant 0 : index
    %c18 = arith.constant 18 : index
    %21 = vector.load %arg2[%c0_19, %c0_20, %c18] : memref<1x8x290xf32, #tpu.memory_space<vmem>>, vector<1x8x256xf32>
    %22 = vector.shape_cast %21 : vector<1x8x256xf32> to vector<8x256xf32>
    %c2_21 = arith.constant 2 : index
    %c0_22 = arith.constant 0 : index
    %23 = vector.load %arg3[%c2_21, %c0_22] : memref<3x256xf32, #tpu.memory_space<vmem>>, vector<1x256xf32>
    %24 = vector.broadcast %23 : vector<1x256xf32> to vector<8x256xf32>
    %25 = arith.mulf %22, %24 : vector<8x256xf32>
    %c0_23 = arith.constant 0 : index
    %c0_24 = arith.constant 0 : index
    %c32 = arith.constant 32 : index
    %26 = vector.load %arg2[%c0_23, %c0_24, %c32] : memref<1x8x290xf32, #tpu.memory_space<vmem>>, vector<1x8x256xf32>
    %27 = vector.shape_cast %26 : vector<1x8x256xf32> to vector<8x256xf32>
    %c0_25 = arith.constant 0 : index
    %c0_26 = arith.constant 0 : index
    %28 = vector.load %arg3[%c0_25, %c0_26] : memref<3x256xf32, #tpu.memory_space<vmem>>, vector<1x256xf32>
    %29 = vector.broadcast %28 : vector<1x256xf32> to vector<8x256xf32>
    %30 = arith.mulf %27, %29 : vector<8x256xf32>
    %c0_27 = arith.constant 0 : index
    %c0_28 = arith.constant 0 : index
    %c33 = arith.constant 33 : index
    %31 = vector.load %arg2[%c0_27, %c0_28, %c33] : memref<1x8x290xf32, #tpu.memory_space<vmem>>, vector<1x8x256xf32>
    %32 = vector.shape_cast %31 : vector<1x8x256xf32> to vector<8x256xf32>
    %c0_29 = arith.constant 0 : index
    %c0_30 = arith.constant 0 : index
    %c34 = arith.constant 34 : index
    %33 = vector.load %arg2[%c0_29, %c0_30, %c34] : memref<1x8x290xf32, #tpu.memory_space<vmem>>, vector<1x8x256xf32>
    %34 = vector.shape_cast %33 : vector<1x8x256xf32> to vector<8x256xf32>
    %c2_31 = arith.constant 2 : index
    %c0_32 = arith.constant 0 : index
    %35 = vector.load %arg3[%c2_31, %c0_32] : memref<3x256xf32, #tpu.memory_space<vmem>>, vector<1x256xf32>
    %36 = vector.broadcast %35 : vector<1x256xf32> to vector<8x256xf32>
    %37 = arith.mulf %34, %36 : vector<8x256xf32>
    %38 = tpu.concatenate %6, %8, %13, %18, %20, %25, %30, %32, %37 in 0 : vector<8x256xf32>, vector<8x256xf32>, vector<8x256xf32>, vector<8x256xf32>, vector<8x256xf32>, vector<8x256xf32>, vector<8x256xf32>, vector<8x256xf32>, vector<8x256xf32> -> vector<72x256xf32>
    %c0_33 = arith.constant 0 : index
    %c0_34 = arith.constant 0 : index
    %39 = vector.load %arg4[%c0_33, %c0_34] : memref<16x72xf32, #tpu.memory_space<vmem>>, vector<16x72xf32>
    %cst = arith.constant dense<0.000000e+00> : vector<16x256xf32>
    %40 = tpu.matmul %39, %38, %cst {dimension_numbers = #tpu.dot_dimension_numbers<[1], [0], [0], [1], [0, 0, 1, 1], [], []>} : vector<16x72xf32>, vector<72x256xf32>, vector<16x256xf32> -> vector<16x256xf32>
    %c0_35 = arith.constant 0 : index
    %c0_36 = arith.constant 0 : index
    %41 = vector.load %arg5[%c0_35, %c0_36] : memref<16x1xf32, #tpu.memory_space<vmem>>, vector<16x1xf32>
    %42 = vector.broadcast %41 : vector<16x1xf32> to vector<16x256xf32>
    %43 = arith.addf %40, %42 : vector<16x256xf32>
    %44 = vector.extract_strided_slice %43 {offsets = [0, 0], sizes = [8, 256], strides = [1, 1]} : vector<16x256xf32> to vector<8x256xf32>
    %45 = vector.extract_strided_slice %43 {offsets = [8, 0], sizes = [8, 256], strides = [1, 1]} : vector<16x256xf32> to vector<8x256xf32>
    %46 = arith.mulf %44, %1 : vector<8x256xf32>
    %47 = arith.addf %46, %45 : vector<8x256xf32>
    %48 = tpu.concatenate %1, %47 in 0 : vector<8x256xf32>, vector<8x256xf32> -> vector<16x256xf32>
    %c0_37 = arith.constant 0 : index
    %c0_38 = arith.constant 0 : index
    %49 = vector.load %arg6[%c0_37, %c0_38] : memref<8x16xf32, #tpu.memory_space<vmem>>, vector<8x16xf32>
    %cst_39 = arith.constant dense<0.000000e+00> : vector<8x256xf32>
    %50 = tpu.matmul %49, %48, %cst_39 {dimension_numbers = #tpu.dot_dimension_numbers<[1], [0], [0], [1], [0, 0, 1, 1], [], []>} : vector<8x16xf32>, vector<16x256xf32>, vector<8x256xf32> -> vector<8x256xf32>
    %c0_40 = arith.constant 0 : index
    %c0_41 = arith.constant 0 : index
    %51 = vector.load %arg7[%c0_40, %c0_41] : memref<8x1xf32, #tpu.memory_space<vmem>>, vector<8x1xf32>
    %52 = vector.broadcast %51 : vector<8x1xf32> to vector<8x256xf32>
    %53 = arith.addf %50, %52 : vector<8x256xf32>
    %c0_42 = arith.constant 0 : index
    %c0_43 = arith.constant 0 : index
    %c0_44 = arith.constant 0 : index
    %54 = vector.load %arg8[%c0_42, %c0_43, %c0_44] : memref<1x8x256xf32, #tpu.memory_space<vmem>>, vector<1x8x256xf32>
    %55 = vector.shape_cast %54 : vector<1x8x256xf32> to vector<8x256xf32>
    %56 = vector.shape_cast %53 : vector<8x256xf32> to vector<1x8x256xf32>
    tpu.vector_store %arg8[%c0_42, %c0_43, %c0_44], %56 {strides = array<i32>} : memref<1x8x256xf32, #tpu.memory_space<vmem>>, vector<1x8x256xf32>,
    return
  }
  func.func @transform_0(%arg0: i32) -> (i32, i32, i32) {
    %c0_i32 = arith.constant 0 : i32
    %c0_i32_0 = arith.constant 0 : i32
    %c0_i32_1 = arith.constant 0 : i32
    return %arg0, %c0_i32, %c0_i32_0 : i32, i32, i32
  }
  func.func @transform_1(%arg0: i32) -> (i32, i32, i32) {
    %c0_i32 = arith.constant 0 : i32
    %c0_i32_0 = arith.constant 0 : i32
    %c0_i32_1 = arith.constant 0 : i32
    return %arg0, %c0_i32, %c0_i32_0 : i32, i32, i32
  }
  func.func @transform_2(%arg0: i32) -> (i32, i32) {
    %c0_i32 = arith.constant 0 : i32
    %c0_i32_0 = arith.constant 0 : i32
    %c0_i32_1 = arith.constant 0 : i32
    return %c0_i32, %c0_i32_0 : i32, i32
  }
  func.func @transform_3(%arg0: i32) -> (i32, i32) {
    %c0_i32 = arith.constant 0 : i32
    %c0_i32_0 = arith.constant 0 : i32
    %c0_i32_1 = arith.constant 0 : i32
    return %c0_i32, %c0_i32_0 : i32, i32
  }
  func.func @transform_4(%arg0: i32) -> (i32, i32) {
    %c0_i32 = arith.constant 0 : i32
    %c0_i32_0 = arith.constant 0 : i32
    %c0_i32_1 = arith.constant 0 : i32
    return %c0_i32, %c0_i32_0 : i32, i32
  }
  func.func @transform_5(%arg0: i32) -> (i32, i32) {
    %c0_i32 = arith.constant 0 : i32
    %c0_i32_0 = arith.constant 0 : i32
    %c0_i32_1 = arith.constant 0 : i32
    return %c0_i32, %c0_i32_0 : i32, i32
  }
  func.func @transform_6(%arg0: i32) -> (i32, i32) {
    %c0_i32 = arith.constant 0 : i32
    %c0_i32_0 = arith.constant 0 : i32
    %c0_i32_1 = arith.constant 0 : i32
    return %c0_i32, %c0_i32_0 : i32, i32
  }
  func.func @transform_7(%arg0: i32) -> (i32, i32, i32) {
    %c0_i32 = arith.constant 0 : i32
    %c0_i32_0 = arith.constant 0 : i32
    %c0_i32_1 = arith.constant 0 : i32
    return %arg0, %c0_i32, %c0_i32_0 : i32, i32, i32
  }
}

</mosaic_0001>

<bundles_post_ra>
// kernel: sft_forward.1
= control target key start
LH: loop header
LB: loop body
LE: loop exit
PB: predicated region body
PF: predicated region fallthrough
CT: control target
= control target key end

     0   :  { %s909_s24 = smov 0   ;;  %s1005_s0 = inlined_call_operand.vmem [shape: f32[2,8,256], index: 0, kind: input, shape index: {}]   ;;  %s1006_s1 = inlined_call_operand.vmem [shape: f32[2,8,290], index: 1, kind: input, shape index: {}]   ;;  %s1007_s2 = inlined_call_operand.vmem [shape: f32[3,256], index: 2, kind: input, shape index: {}]   ;;  %s1008_s3 = inlined_call_operand.vmem [shape: f32[16,72], index: 3, kind: input, shape index: {}]   ;;  %s1009_s4 = inlined_call_operand.vmem [shape: f32[16,1], index: 4, kind: input, shape index: {}]   ;;  %s1010_s5 = inlined_call_operand.vmem [shape: f32[8,16], index: 5, kind: input, shape index: {}]   ;;  %s1011_s6 = inlined_call_operand.vmem [shape: f32[8,1], index: 6, kind: input, shape index: {}]   ;;  %s1012_s7 = inlined_call_operand.vmem [shape: f32[2,8,256], index: 7, kind: output, shape index: {}]  }
   0x1 LB: > { %s747_s25 = sadd.s32 4294967295, %s852_s24   ;;  %p751_p0 = scmp.ge.s32.totalorder %s852_s24, 1  ;;  %s852_s24 = sphi %s909_s24, %s17_s24  }
   0x2   : > { %p247_p1 = scmp.lt.s32.totalorder %s852_s24, 3 }
   0x4   : > { %p248_p2 = pnand %p751_p0, %p247_p1 }
   0x5   : > { %v305_v0 = vlaneseq (!%p248_p2)  ;;  %v757_v2 = vld [vmem:[%s1007_s2 + $0x2] ss:$4 sm:$0x3] (!%p248_p2)  ;;  %v303_v3 = vld [vmem:[%s1007_s2] ss:$4 sm:$0x3] (!%p248_p2) }
   0x6   : > { %251 = sbr.rel (%p248_p2) target bundleno = 720 (0x2d0), region = 48  ;;  %p284_p3 = scmp.lt.s32.totalorder (!%p248_p2), %s747_s25, 1  ;;  %vm333_vm0 = vcmask (!%p248_p2), 15360   ;;  %vm345_vm1 = vcmask (!%p248_p2), 130048   ;;  %vm357_vm2 = vcmask (!%p248_p2), 146432   ;;  %vm369_vm3 = vcmask (!%p248_p2), 261120  }
   0x7   : > { %v306_v1 = vshrl.u32 (!%p248_p2), %v305_v0, 7  ;;  %s854_s30 = smov (!%p248_p2), 2   ;;  %s855_s8 = smov (!%p248_p2), 16   ;;  %vm381_vm4 = vcmask (!%p248_p2), 277504   ;;  %vm398_vm5 = vcmask (!%p248_p2), 1039360   ;;  %v865_v52 = vmov (!%p248_p2), 0.0  }
   0x8   : > { %s856_s10 = smov (!%p248_p2), 18   ;;  %s857_s14 = smov (!%p248_p2), 32   ;;  %580 = vmatprep.mubr.f32.mxu0 (!%p248_p2), %v865_v52  ;;  %671 = vmatprep.mubr.f32.mxu1 (!%p248_p2), %v865_v52  ;;  %v868_v58 = vmov (!%p248_p2), 0   ;;  %v498_v59 = vld [vmem:[%s1009_s4 + $0x8] sm:$0xff] (!%p248_p2)  ;;  %v497_v61 = vld [vmem:[%s1009_s4] sm:$0xff] (!%p248_p2)  ;;  %vm412_vm6 = vcmask (!%p248_p2), 1031168  }
   0x9   : > { %v307_v4 = vsub.s32 (!%p248_p2), 0, %v306_v1  ;;  %v311_v5 = vsub.s32 (!%p248_p2), 1, %v306_v1  ;;  %s858_s15 = smov (!%p248_p2), 34   ;;  %s859_s16 = smov (!%p248_p2), 127   ;;  %844 = vset.pattern.permute.xlu1 (!%p248_p2), %v868_v58  ;;  %845 = vset.pattern.permute.xlu0 (!%p248_p2), %v868_v58  ;;  %v598_v62 = vld [vmem:[%s1011_s6] sm:$0xff] (!%p248_p2)  ;;  %vm426_vm7 = vcmask (!%p248_p2), 916480  }
   0xa   : > { %s860_s17 = smov (!%p248_p2), 111   ;;  %s861_s18 = smov (!%p248_p2), 126   ;;  %vm437_vm8 = vcmask (!%p248_p2), 908288   ;;  %vm451_vm9 = vcmask (!%p248_p2), 900096   ;;  %vm465_vm10 = vcmask (!%p248_p2), 785408   ;;  %vm476_vm11 = vcmask (!%p248_p2), 777216  }
   0xb   : > { %v324_v6 = vrot.slane (!%p248_p2), %v757_v2, %v307_v4  ;;  %v923_v7 = vrot.slane (!%p248_p2), %v303_v3, %v307_v4  ;;  %v328_v8 = vrot.slane (!%p248_p2), %v757_v2, %v311_v5  ;;  %v926_v9 = vrot.slane (!%p248_p2), %v303_v3, %v311_v5  ;;  %s862_s19 = smov (!%p248_p2), 112   ;;  %s863_s20 = smov (!%p248_p2), 110  }
   0xc   : > { %s864_s21 = smov (!%p248_p2), 96   ;;  %s866_s22 = smov (!%p248_p2), 95   ;;  %vm490_vm12 = vcmask (!%p248_p2), 769024   ;;  %vm509_vm13 = vcmask (!%p248_p2), 588800  }
   0xd   : > { %329 = vrot.lane.b32.xlu0 %v324_v6, %s854_s30  ;;  %341 = vrot.lane.b32.xlu1 %v923_v7, %s855_s8  ;;  %s1014_s25 = smov (!%p284_p3, %s747_s25), 1  ;;  %s867_s23 = smov 94  }
   0xe   : > { %s785_s9 = smul.u32 24, %s1014_s25 }
  0x10   : > { %s293_s13 = scalar_lea.vmem %s1006_s1, %s785_s9 }
  0x11   : > { %331 = vrot.lane.b32.xlu0 %v328_v8, %s854_s30  ;;  %343 = vrot.lane.b32.xlu1 %v926_v9, %s855_s8  ;;  %v937_v10 = vld [vmem:[%s293_s13 + $0x8] sm:$0xff]  ;;  %v939_v11 = vld [vmem:[%s293_s13 + $0x10] sm:$0xff] }
  0x12   : > { %v943_v12 = vpack.i.bf16 %v939_v11, %v937_v10  ;;  %v945_v13 = vld [vmem:[%s293_s13] sm:$0xff]  ;;  %v316_v48 = vmul.f32 %v926_v9, %v937_v10  ;;  %s763_s13 = sshll.u32 %s1014_s25, 4 }
  0x13   : > { %v315_v49 = vmul.f32 %v923_v7, %v945_v13 }
  0x15   : > { %353 = vrot.lane.b32.xlu0 %v324_v6, %s856_s10  ;;  %355 = vrot.lane.b32.xlu1 %v328_v8, %s856_s10 }
  0x19   : > { %365 = vrot.lane.b32.xlu0 %v923_v7, %s857_s14  ;;  %367 = vrot.lane.b32.xlu1 %v926_v9, %s857_s14 }
  0x1d   : > { %377 = vrot.lane.b32.xlu0 %v324_v6, %s858_s15  ;;  %379 = vrot.lane.b32.xlu1 %v328_v8, %s858_s15 }
  0x21   : > { %810 = vrot.lane.b32.xlu0 %v943_v12, %s859_s16  ;;  %392 = vrot.lane.b32.xlu1 %v945_v13, %s859_s16  ;;  %s288_s16 = scalar_lea.vmem %s1005_s0, %s763_s13 }
  0x25   : > { %815 = vrot.lane.b32.xlu0 %v943_v12, %s860_s17 }
  0x29   : > { %431 = vrot.lane.b32.xlu0 %v945_v13, %s860_s17 }
  0x7f   : > { %v330_v14 = vpop.permute.xlu0 %329  ;;  %v342_v15 = vpop.permute.xlu1 %341 }
  0x80   : > { %v338_v16 = vmul.f32 %v330_v14, %v945_v13  ;;  %v350_v17 = vmul.f32 %v342_v15, %v945_v13 }
  0x82   : > { %406 = vrot.lane.b32.xlu0 %v338_v16, %s861_s18  ;;  %420 = vrot.lane.b32.xlu1 %v350_v17, %s862_s19 }
  0x83   : > { %v332_v18 = vpop.permute.xlu0 %331  ;;  %v344_v19 = vpop.permute.xlu1 %343 }
  0x84   : > { %v334_v20 = vsel %vm333_vm0, %v330_v14, %v332_v18  ;;  %v340_v21 = vmul.f32 %v332_v18, %v939_v11  ;;  %v346_v22 = vsel %vm345_vm1, %v342_v15, %v344_v19  ;;  %v352_v26 = vmul.f32 %v344_v19, %v939_v11 }
  0x85   : > { %v339_v23 = vmul.f32 %v334_v20, %v937_v10  ;;  %v351_v25 = vmul.f32 %v346_v22, %v937_v10 }
  0x87   : > { %v819_v24 = vpack.i.bf16 %v340_v21, %v339_v23  ;;  %v354_v27 = vpop.permute.xlu0 %353  ;;  %v356_v28 = vpop.permute.xlu1 %355  ;;  %v824_v31 = vpack.i.bf16 %v352_v26, %v351_v25 }
  0x88   : > { %v362_v29 = vmul.f32 %v354_v27, %v945_v13  ;;  %v358_v30 = vsel %vm357_vm2, %v354_v27, %v356_v28  ;;  %v364_v32 = vmul.f32 %v356_v28, %v939_v11 }
  0x89   : > { %820 = vrot.lane.b32.xlu0 %v819_v24, %s861_s18  ;;  %v363_v35 = vmul.f32 %v358_v30, %v937_v10 }
  0x8a   : > { %445 = vrot.lane.b32.xlu1 %v362_v29, %s863_s20 }
  0x8b   : > { %v366_v33 = vpop.permute.xlu0 %365  ;;  %v368_v34 = vpop.permute.xlu1 %367  ;;  %v829_v43 = vpack.i.bf16 %v364_v32, %v363_v35 }
  0x8c   : > { %v374_v36 = vmul.f32 %v366_v33, %v945_v13  ;;  %v370_v37 = vsel %vm369_vm3, %v366_v33, %v368_v34  ;;  %v376_v38 = vmul.f32 %v368_v34, %v939_v11 }
  0x8d   : > { %v375_v39 = vmul.f32 %v370_v37, %v937_v10 }
  0x8e   : > { %825 = vrot.lane.b32.xlu1 %v824_v31, %s862_s19  ;;  %459 = vrot.lane.b32.xlu0 %v374_v36, %s864_s21 }
  0x8f   : > { %v839_v40 = vpack.i.bf16 %v376_v38, %v375_v39  ;;  %v378_v41 = vpop.permute.xlu0 %377  ;;  %v380_v42 = vpop.permute.xlu1 %379 }
  0x90   : > { %v382_v44 = vsel %vm381_vm4, %v378_v41, %v380_v42  ;;  %v386_v53 = vmul.f32 %v378_v41, %v945_v13  ;;  %v388_v60 = vmul.f32 %v380_v42, %v939_v11 }
  0x91   : > { %v387_v45 = vmul.f32 %v382_v44, %v937_v10 }
  0x92   : > { %830 = vrot.lane.b32.xlu1 %v829_v43, %s863_s20  ;;  %840 = vrot.lane.b32.xlu0 %v839_v40, %s864_s21  ;;  %s298_s20 = scalar_lea.vmem %s1012_s7, %s763_s13 }
  0x93   : > { %v811_v46 = vpop.permute.xlu0 %810  ;;  %v393_v47 = vpop.permute.xlu1 %392 }
  0x94   : > { %v813_v50 = vunpack.i.h.bf16 %v811_v46  ;;  %v812_v51 = vunpack.i.l.bf16 %v811_v46 }
  0x96   : > { %835 = vrot.lane.b32.xlu1 %v943_v12, %s866_s22  ;;  %486 = vrot.lane.b32.xlu0 %v387_v45, %s867_s23  ;;  %v399_v54 = vsel %vm398_vm5, %v393_v47, %v812_v51  ;;  %v400_v55 = vsel %vm398_vm5, %v812_v51, %v813_v50  ;;  %v495_v45 = vld [vmem:[%s1008_s3] sm:$0xff]  ;;  %v496_v47 = vld [vmem:[%s1008_s3 + $0x8] sm:$0xff] }
  0x97   : > { %v765_v56 = vpack.c.bf16 %v400_v55, %v316_v48  ;;  %v767_v57 = vpack.c.bf16 %v399_v54, %v315_v49  ;;  %v816_v63 = vpop.permute.xlu0 %815  ;;  %v299_v55 = vld [vmem:[%s288_s16] sm:$0xff] }
  0x98   : > { %v818_v11 = vunpack.i.h.bf16 %v816_v63  ;;  %v817_v12 = vunpack.i.l.bf16 %v816_v63 }
  0x99   : > { %766 = vmatprep.subr.bf16.mxu0 %v765_v56  ;;  %v300_v56 = vld [vmem:[%s288_s16 + $0x8] sm:$0xff] }
  0x9a   : > { %470 = vrot.lane.b32.xlu1 %v945_v13, %s866_s22  ;;  %484 = vrot.lane.b32.xlu0 %v386_v53, %s867_s23  ;;  %v439_v24 = vsel %vm437_vm8, %v817_v12, %v818_v11 }
  0x9b   : > { %768 = vmatpush1.bf16.msra.mxu0 %v767_v57  ;;  %v432_v0 = vpop.permute.xlu0 %431 }
  0x9c   : > { %v438_v25 = vsel %vm437_vm8, %v432_v0, %v817_v12 }
  0x9e   : > { %488 = vrot.lane.b32.xlu1 %v388_v60, %s867_s23  ;;  %506 = vperm.xlu0 %845, %v498_v59  }
  0xa2   : > { %501 = vperm.xlu1 %844, %v497_v61  }
  0xa6   : > { %601 = vperm.xlu1 %844, %v598_v62  }
  0xf4   : > { %v421_v1 = vpop.permute.xlu1 %420  ;;  %v407_v2 = vpop.permute.xlu0 %406 }
  0xfb   : > { %v821_v3 = vpop.permute.xlu0 %820 }
  0xfc   : > { %v446_v4 = vpop.permute.xlu1 %445  ;;  %v823_v5 = vunpack.i.h.bf16 %v821_v3  ;;  %v822_v6 = vunpack.i.l.bf16 %v821_v3 }
  0xfe   : > { %v414_v13 = vsel %vm412_vm6, %v822_v6, %v823_v5  ;;  %v413_v15 = vsel %vm412_vm6, %v407_v2, %v822_v6  ;;  %v597_v2 = vld [vmem:[%s1010_s5] sm:$0xff] }
 0x100   : > { %v826_v7 = vpop.permute.xlu1 %825  ;;  %v460_v8 = vpop.permute.xlu0 %459 }
 0x101   : > { %v828_v9 = vunpack.i.h.bf16 %v826_v7  ;;  %v827_v10 = vunpack.i.l.bf16 %v826_v7 }
 0x103   : > { %v428_v14 = vsel %vm426_vm7, %v827_v10, %v828_v9  ;;  %v427_v16 = vsel %vm426_vm7, %v421_v1, %v827_v10 }
 0x104   : > { %v831_v17 = vpop.permute.xlu1 %830  ;;  %v841_v18 = vpop.permute.xlu0 %840  ;;  %v769_v19 = vpack.c.bf16 %v428_v14, %v414_v13  ;;  %v771_v20 = vpack.c.bf16 %v427_v16, %v413_v15 }
 0x105   : > { %v833_v21 = vunpack.i.h.bf16 %v831_v17  ;;  %v832_v22 = vunpack.i.l.bf16 %v831_v17  ;;  %v843_v23 = vunpack.i.h.bf16 %v841_v18  ;;  %v842_v26 = vunpack.i.l.bf16 %v841_v18 }
 0x106   : > { %770 = vmatprep.subr.bf16.mxu0 %v769_v19 }
 0x107   : > { %772 = vmatpush1.bf16.msra.mxu0 %v771_v20  ;;  %v453_v27 = vsel %vm451_vm9, %v832_v22, %v833_v21  ;;  %v452_v28 = vsel %vm451_vm9, %v446_v4, %v832_v22  ;;  %v467_v34 = vsel %vm465_vm10, %v842_v26, %v843_v23  ;;  %v466_v39 = vsel %vm465_vm10, %v460_v8, %v842_v26 }
 0x108   : > { %v836_v29 = vpop.permute.xlu1 %835  ;;  %v773_v30 = vpack.c.bf16 %v453_v27, %v439_v24  ;;  %v775_v31 = vpack.c.bf16 %v452_v28, %v438_v25  ;;  %v487_v35 = vpop.permute.xlu0 %486 }
 0x109   : > { %v838_v32 = vunpack.i.h.bf16 %v836_v29  ;;  %v837_v33 = vunpack.i.l.bf16 %v836_v29 }
 0x10a   : > { %774 = vmatprep.subr.bf16.mxu0 %v773_v30 }
 0x10b   : > { %776 = vmatpush1.bf16.msra.mxu0 %v775_v31  ;;  %v478_v36 = vsel %vm476_vm11, %v837_v33, %v838_v32 }
 0x10c   : > { %v471_v37 = vpop.permute.xlu1 %470  ;;  %v777_v38 = vpack.c.bf16 %v478_v36, %v467_v34  ;;  %v485_v42 = vpop.permute.xlu0 %484 }
 0x10d   : > { %v477_v40 = vsel %vm476_vm11, %v471_v37, %v837_v33  ;;  %v491_v46 = vsel %vm490_vm12, %v485_v42, %v487_v35 }
 0x10e   : > { %v779_v41 = vpack.c.bf16 %v477_v40, %v466_v39  ;;  %778 = vmatprep.subr.bf16.mxu0 %v777_v38 }
 0x110   : > { %v489_v43 = vpop.permute.xlu1 %488  ;;  %780 = vmatpush1.bf16.msra.mxu0 %v779_v41 }
 0x111   : > { %v492_v44 = vsel %vm490_vm12, %v487_v35, %v489_v43 }
 0x112   : > { %532 = vmatprep.subr.mxu0 %v492_v44 }
 0x114   : > { %533 = vmatpush1.msra.mxu0 %v491_v46 }
 0x115   : > { %758 = vmatmul.mubr.msk.f32.vlgmr.msra.gmra.mrb[0].mxu0 %vm509_vm13, %v495_v45 }
 0x116   : > { %586 = vmatprep.mubr.f32.mxu0 %v865_v52 }
 0x119   : > { %759 = vmatmul.mubr.msk.f32.gmra.mrb[2].mxu0 %vm509_vm13, %v496_v47 }
 0x11d   : > { %v507_v54 = vpop.permute.xlu0 %506 }
 0x121   : > { %v502_v48 = vpop.permute.xlu1 %501 }
 0x125   : > { %v602_v3 = vpop.permute.xlu1 %601 }
 0x1e8   : > { %v582_v49 = vpop.f32.mrb[0].mxu0 }
 0x1e9   : > { %v583_v50 = vadd.f32 %v582_v49, %v502_v48  ;;  %v584_v51 = vpop.f32.mrb[1].mxu0 }
 0x1ea   : > { %v585_v53 = vadd.f32 %v584_v51, %v502_v48 }
 0x1eb   : > { %v593_v59 = vmul.f32 %v583_v50, %v299_v55 }
 0x1ec   : > { %v588_v57 = vpop.f32.mrb[2].mxu0  ;;  %v594_v61 = vmul.f32 %v585_v53, %v300_v56 }
 0x1ed   : > { %v589_v52 = vadd.f32 %v588_v57, %v507_v54  ;;  %v590_v58 = vpop.f32.mrb[3].mxu0 }
 0x1ee   : > { %v591_v60 = vadd.f32 %v590_v58, %v507_v54 }
 0x1ef   : > { %v595_v62 = vadd.f32 %v593_v59, %v589_v52 }
 0x1f0   : > { %v596_v63 = vadd.f32 %v594_v61, %v591_v60 }
 0x1f1   : > { %v783_v1 = vpack.c.bf16 %v595_v62, %v299_v55 }
 0x1f2   : > { %v781_v0 = vpack.c.bf16 %v596_v63, %v300_v56 }
 0x1f4   : > { %782 = vmatprep.subr.bf16.mxu1 %v781_v0 }
 0x1f5   : > { %784 = vmatpush1.bf16.msra.mxu1 %v783_v1 }
 0x1f8   : > { %760 = vmatmul.mubr.msk.f32.vlgmr.msra.gmra.mrb[0].mxu1 %vm345_vm1, %v597_v2 }
 0x2cb   : > { %v673_v4 = vpop.f32.mrb[0].mxu1 }
 0x2cc   : > { %v674_v5 = vadd.f32 %v673_v4, %v602_v3  ;;  %v675_v6 = vpop.f32.mrb[1].mxu1 }
 0x2cd   : > { %v676_v7 = vadd.f32 %v675_v6, %v602_v3 }
 0x2ce   : > { %678 = vst [vmem:[%s298_s20] sm:$0xff] %v674_v5 }
 0x2cf   : > { %679 = vst [vmem:[%s298_s20 + $0x8] sm:$0xff] %v676_v7 }
 0x2d0 PF: > { %s17_s24 = sadd.s32 1, %s852_s24  }
 0x2d1   : > { %p14_p4 = scmp.ge.s32.totalorder %s17_s24, 4  }
 0x2d3   :  { %16 = sbr.rel (!%p14_p4) target bundleno = 1 (0x1), region = 82 }

</bundles_post_ra>
